<compile_context>
chip_gen: v6e
topology: v6e:2x2x1
jax: 0.10.0
libtpu: 0.0.40
codegen_flags: <defaults>
</compile_context>

<pallas_src>
import jax
import jax.numpy as jnp
from jax.experimental import pallas as pl
from jax.experimental.pallas import tpu as pltpu

_LN2 = 0.6931471805599453
_LANES = 128
_BC_TILE_CAP = 256
_HW_TILE_MAX = 16384
_TARGET_BLOCK_ELEMS = 256 * 4096  # ~4 MiB f32 per input per pipeline buffer


def _round_up(a, m):
    return (a + m - 1) // m * m


def _dice_bce_kernel(x_ref, t_ref, bce_ref, inter_ref, pred_ref, ground_ref):
    k = pl.program_id(1)

    # Output blocks are revisited across the (innermost, "arbitrary") HW axis
    # and act as lane-wise accumulators; zero them on the first HW step.
    @pl.when(k == 0)
    def _():
        bce_ref[...] = jnp.zeros_like(bce_ref)
        inter_ref[...] = jnp.zeros_like(inter_ref)
        pred_ref[...] = jnp.zeros_like(pred_ref)
        ground_ref[...] = jnp.zeros_like(ground_ref)

    x = x_ref[...].astype(jnp.float32)
    t = t_ref[...].astype(jnp.float32)

    # Hoist x*t: reused by both the BCE term and the Dice intersection.
    xt = x * t

    # Numerically stable BCE-with-logits: max(x,0) - x*t + log1p(exp(-|x|)).
    # No column mask: padded columns contribute exactly ln(2) each and are
    # corrected once in the wrapper.
    # TODO(synk): on v7x with bf16 inputs the exp/log1p could use the bf16 EUP path.
    bce = jnp.maximum(x, 0.0) - xt + jnp.log1p(jnp.exp(-jnp.abs(x)))

    def lane_sum(v):
        # (bc_tile, hw_tile) -> (bc_tile, 128) with lane-tile-aligned slices and
        # pure VALU adds: no XLU cross-lane reduce, no narrow stores.
        acc = v[:, 0:_LANES]
        for j in range(1, v.shape[1] // _LANES):
            acc = acc + v[:, j * _LANES:(j + 1) * _LANES]
        return acc

    bce_ref[...] += lane_sum(bce)
    inter_ref[...] += lane_sum(xt)
    pred_ref[...] += lane_sum(x)
    ground_ref[...] += lane_sum(t)


def _choose_bc_tiling(bc):
    """Returns (bc_tile, bc_pad). Prefers no padding; splits in two when easy."""
    if bc <= _BC_TILE_CAP:
        if bc >= 16 and bc % 16 == 0:
            return bc // 2, bc      # two blocks on the "parallel" axis (v7x megacore)
        return bc, bc               # single full-dim block, no pad
    bc_pad = _round_up(bc, 8)
    for tile in range(_BC_TILE_CAP, 7, -8):
        if bc_pad % tile == 0:
            return tile, bc_pad
    return 8, bc_pad                # unreachable (8 always divides bc_pad)


def _choose_hw_tiling(hw, bc_tile):
    """Returns (hw_tile, hw_pad). hw_tile is always a multiple of 128."""
    cap = (_TARGET_BLOCK_ELEMS // max(bc_tile, 1)) // _LANES * _LANES
    cap = max(_LANES, min(_HW_TILE_MAX, cap))
    if hw <= cap:
        padded = _round_up(hw, _LANES)
        return padded, padded       # single block; tiny column pad only if ragged
    if hw % _LANES == 0:
        for tile in range(cap, _LANES - 1, -_LANES):
            if hw % tile == 0:
                return tile, hw     # divisor tile -> no jnp.pad at all
    # Ragged + large HW: pad fallback (BCE corrected by ln(2) per padded column).
    return cap, _round_up(hw, cap)


def dice_bce_loss(inputs, targets, *, bc_tile=None, hw_tile=None):
    """inputs: (B, C, H, W) logits; targets: (B, C, H, W) in {0, 1}.

    Any float dtype accepted; compute is f32 inside the kernel. Pass bf16
    inputs/targets to halve HBM traffic (the kernel is memory-bound).
    """
    B, C, H, W = inputs.shape
    BC, HW = B * C, H * W
    x2d = inputs.reshape(BC, HW)
    t2d = targets.reshape(BC, HW)

    if bc_tile is None:
        bc_tile, bc_pad = _choose_bc_tiling(BC)
    else:
        bc_tile = _round_up(bc_tile, 8)
        bc_pad = _round_up(BC, bc_tile)
    if hw_tile is None:
        hw_tile, hw_pad = _choose_hw_tiling(HW, bc_tile)
    else:
        hw_tile = _round_up(min(hw_tile, HW), _LANES)
        hw_pad = _round_up(HW, hw_tile)

    if (bc_pad, hw_pad) != (BC, HW):
        # Fallback only for ragged shapes; zero padding keeps dice sums exact
        # and adds exactly ln(2) per padded column to each valid row's BCE sum.
        x2d = jnp.pad(x2d, ((0, bc_pad - BC), (0, hw_pad - HW)))
        t2d = jnp.pad(t2d, ((0, bc_pad - BC), (0, hw_pad - HW)))

    grid = (bc_pad // bc_tile, hw_pad // hw_tile)

    n = bc_pad * hw_pad
    in_bytes = x2d.size * x2d.dtype.itemsize + t2d.size * t2d.dtype.itemsize
    out_bytes = 4 * bc_pad * _LANES * 4
    cost = pl.CostEstimate(
        flops=7 * n,                 # mul/add/max/abs/neg + lane accumulate (approx)
        transcendentals=2 * n,       # exp + log1p per element
        bytes_accessed=int(in_bytes + out_bytes),
    )

    step_bytes = bc_tile * hw_tile * (x2d.dtype.itemsize + t2d.dtype.itemsize)
    vmem_limit = int(min(max(32 << 20, 2 * step_bytes + (8 << 20)), 64 << 20))

    out_shape = tuple(
        jax.ShapeDtypeStruct((bc_pad, _LANES), jnp.float32) for _ in range(4))
    out_specs = [pl.BlockSpec((bc_tile, _LANES), lambda i, k: (i, 0))
                 for _ in range(4)]

    bce_l, inter_l, pred_l, ground_l = pl.pallas_call(
        _dice_bce_kernel,
        out_shape=out_shape,
        grid_spec=pltpu.PrefetchScalarGridSpec(
            num_scalar_prefetch=0,
            grid=grid,
            in_specs=[
                pl.BlockSpec((bc_tile, hw_tile), lambda i, k: (i, k)),
                pl.BlockSpec((bc_tile, hw_tile), lambda i, k: (i, k)),
            ],
            out_specs=out_specs,
        ),
        compiler_params=pltpu.CompilerParams(
            dimension_semantics=("parallel", "arbitrary"),
            vmem_limit_bytes=vmem_limit,
        ),
        cost_estimate=cost,
    )(x2d, t2d)

    # Tiny final combine in JAX: one cross-lane reduce over (BC, 128), the
    # padded-column BCE correction, and means with TRUE global counts.
    bce_sum = jnp.sum(bce_l[:BC])
    bce_sum = bce_sum - jnp.float32(BC * (hw_pad - HW) * _LN2)
    bce_mean = bce_sum / jnp.float32(BC * HW)

    smooth = jnp.float32(1e-5)
    inter = jnp.sum(inter_l[:BC], axis=1)
    pred = jnp.sum(pred_l[:BC], axis=1)
    ground = jnp.sum(ground_l[:BC], axis=1)
    dice_mean = jnp.mean(1.0 - (2.0 * inter + smooth) / (ground + pred + smooth))

    return 0.8 * bce_mean + 0.2 * dice_mean


def _reference_loss(inputs, targets):
    # Pure-JAX reference for verification.
    x = inputs.astype(jnp.float32)
    t = targets.astype(jnp.float32)
    bce = jnp.mean(jnp.maximum(x, 0.0) - x * t + jnp.log1p(jnp.exp(-jnp.abs(x))))
    B, C = x.shape[:2]
    xf = x.reshape(B, C, -1)
    tf = t.reshape(B, C, -1)
    inter = jnp.sum(xf * tf, axis=-1)
    pred_o = jnp.sum(xf, axis=-1)
    ground_o = jnp.sum(tf, axis=-1)
    dice = jnp.mean(1.0 - (2.0 * inter + 1e-5) / (ground_o + pred_o + 1e-5))
    return 0.8 * bce + 0.2 * dice


if __name__ == "__main__":
    key = jax.random.PRNGKey(0)

    # Case 1: aligned shape, auto tiles (single block, no padding).
    k1, k2, key = jax.random.split(key, 3)
    B, C, H, W = 2, 4, 16, 16
    inputs = jax.random.normal(k1, (B, C, H, W), dtype=jnp.float32)
    targets = (jax.random.uniform(k2, (B, C, H, W)) > 0.5).astype(jnp.float32)

    loss = dice_bce_loss(inputs, targets)
    jax.block_until_ready(loss)
    ref = _reference_loss(inputs, targets)
    assert jnp.allclose(loss, ref, atol=1e-5, rtol=1e-5), (loss, ref)

    # Case 1b: force a multi-step HW grid to exercise the accumulate-across-k
    # (pl.when init + output-resident accumulator) path.
    loss_tiled = dice_bce_loss(inputs, targets, bc_tile=8, hw_tile=128)
    jax.block_until_ready(loss_tiled)
    assert jnp.allclose(loss_tiled, ref, atol=1e-5, rtol=1e-5), (loss_tiled, ref)

    # Case 2: unaligned shape, auto tiles -> full-dim blocks, NO padding.
    k3, k4, key = jax.random.split(key, 3)
    B2, C2, H2, W2 = 2, 3, 10, 10
    inputs2 = jax.random.normal(k3, (B2, C2, H2, W2), dtype=jnp.float32)
    targets2 = (jax.random.uniform(k4, (B2, C2, H2, W2)) > 0.5).astype(jnp.float32)

    loss2 = dice_bce_loss(inputs2, targets2)
    jax.block_until_ready(loss2)
    ref2 = _reference_loss(inputs2, targets2)
    assert jnp.allclose(loss2, ref2, atol=1e-5, rtol=1e-5), (loss2, ref2)

    # Case 2b: force padding on both axes -> exercises the ln(2) BCE column
    # correction and the padded-row slice.
    loss2b = dice_bce_loss(inputs2, targets2, bc_tile=8, hw_tile=128)
    jax.block_until_ready(loss2b)
    assert jnp.allclose(loss2b, ref2, atol=1e-5, rtol=1e-5), (loss2b, ref2)

    # Case 3: BC divisible by 16 -> auto split into 2 blocks on the "parallel"
    # axis (v7x megacore path).
    k5, k6, key = jax.random.split(key, 3)
    B3, C3, H3, W3 = 2, 8, 16, 16
    inputs3 = jax.random.normal(k5, (B3, C3, H3, W3), dtype=jnp.float32)
    targets3 = (jax.random.uniform(k6, (B3, C3, H3, W3)) > 0.5).astype(jnp.float32)

    loss3 = dice_bce_loss(inputs3, targets3)
    jax.block_until_ready(loss3)
    ref3 = _reference_loss(inputs3, targets3)
    assert jnp.allclose(loss3, ref3, atol=1e-5, rtol=1e-5), (loss3, ref3)

    # Case 4: bf16 inputs/targets (half the HBM bytes); kernel upcasts to f32.
    inputs_bf16 = inputs.astype(jnp.bfloat16)
    targets_bf16 = targets.astype(jnp.bfloat16)
    loss4 = dice_bce_loss(inputs_bf16, targets_bf16)
    jax.block_until_ready(loss4)
    ref4 = _reference_loss(inputs_bf16, targets_bf16)
    assert jnp.allclose(loss4, ref4, atol=1e-4, rtol=1e-4), (loss4, ref4)

    print("KERNEL_OK")
</pallas_src>

<mosaic_0001>
module attributes {stable_mosaic.version = 11 : i64} {
  func.func @_dice_bce_kernel(%arg0: i32, %arg1: i32, %arg2: memref<8x256xf32, #tpu.memory_space<vmem>>, %arg3: memref<8x256xf32, #tpu.memory_space<vmem>>, %arg4: memref<8x128xf32, #tpu.memory_space<vmem>>, %arg5: memref<8x128xf32, #tpu.memory_space<vmem>>, %arg6: memref<8x128xf32, #tpu.memory_space<vmem>>, %arg7: memref<8x128xf32, #tpu.memory_space<vmem>>) attributes {dimension_semantics = [#tpu.dimension_semantics<parallel>, #tpu.dimension_semantics<arbitrary>], iteration_bounds = array<i64: 1, 1>, scalar_prefetch = 0 : i64, scratch_operands = 0 : i64, tpu.core_type = #tpu.core_type<tc>, window_params = [{transform_indices = @transform_0, window_bounds = array<i64: 8, 256>}, {transform_indices = @transform_1, window_bounds = array<i64: 8, 256>}, {transform_indices = @transform_2, window_bounds = array<i64: 8, 128>}, {transform_indices = @transform_3, window_bounds = array<i64: 8, 128>}, {transform_indices = @transform_4, window_bounds = array<i64: 8, 128>}, {transform_indices = @transform_5, window_bounds = array<i64: 8, 128>}]} {
    %c0_i32 = arith.constant 0 : i32
    %0 = arith.cmpi eq, %arg1, %c0_i32 : i32
    %1 = arith.extui %0 : i1 to i32
    %c0_i32_0 = arith.constant 0 : i32
    %2 = arith.cmpi ne, %1, %c0_i32_0 : i32
    scf.if %2 {
      %cst_21 = arith.constant 0.000000e+00 : f32
      %39 = vector.broadcast %cst_21 : f32 to vector<8x128xf32>
      %c0_22 = arith.constant 0 : index
      %c0_23 = arith.constant 0 : index
      %40 = vector.load %arg4[%c0_22, %c0_23] : memref<8x128xf32, #tpu.memory_space<vmem>>, vector<8x128xf32>
      tpu.vector_store %arg4[%c0_22, %c0_23], %39 {strides = array<i32>} : memref<8x128xf32, #tpu.memory_space<vmem>>, vector<8x128xf32>,
      %cst_24 = arith.constant 0.000000e+00 : f32
      %41 = vector.broadcast %cst_24 : f32 to vector<8x128xf32>
      %c0_25 = arith.constant 0 : index
      %c0_26 = arith.constant 0 : index
      %42 = vector.load %arg5[%c0_25, %c0_26] : memref<8x128xf32, #tpu.memory_space<vmem>>, vector<8x128xf32>
      tpu.vector_store %arg5[%c0_25, %c0_26], %41 {strides = array<i32>} : memref<8x128xf32, #tpu.memory_space<vmem>>, vector<8x128xf32>,
      %cst_27 = arith.constant 0.000000e+00 : f32
      %43 = vector.broadcast %cst_27 : f32 to vector<8x128xf32>
      %c0_28 = arith.constant 0 : index
      %c0_29 = arith.constant 0 : index
      %44 = vector.load %arg6[%c0_28, %c0_29] : memref<8x128xf32, #tpu.memory_space<vmem>>, vector<8x128xf32>
      tpu.vector_store %arg6[%c0_28, %c0_29], %43 {strides = array<i32>} : memref<8x128xf32, #tpu.memory_space<vmem>>, vector<8x128xf32>,
      %cst_30 = arith.constant 0.000000e+00 : f32
      %45 = vector.broadcast %cst_30 : f32 to vector<8x128xf32>
      %c0_31 = arith.constant 0 : index
      %c0_32 = arith.constant 0 : index
      %46 = vector.load %arg7[%c0_31, %c0_32] : memref<8x128xf32, #tpu.memory_space<vmem>>, vector<8x128xf32>
      tpu.vector_store %arg7[%c0_31, %c0_32], %45 {strides = array<i32>} : memref<8x128xf32, #tpu.memory_space<vmem>>, vector<8x128xf32>,
    } else {
    }
    %c0 = arith.constant 0 : index
    %c0_1 = arith.constant 0 : index
    %3 = vector.load %arg2[%c0, %c0_1] : memref<8x256xf32, #tpu.memory_space<vmem>>, vector<8x256xf32>
    %c0_2 = arith.constant 0 : index
    %c0_3 = arith.constant 0 : index
    %4 = vector.load %arg3[%c0_2, %c0_3] : memref<8x256xf32, #tpu.memory_space<vmem>>, vector<8x256xf32>
    %5 = arith.mulf %3, %4 : vector<8x256xf32>
    %cst = arith.constant 0.000000e+00 : f32
    %6 = vector.broadcast %cst : f32 to vector<8x256xf32>
    %7 = arith.maximumf %3, %6 : vector<8x256xf32>
    %8 = arith.subf %7, %5 : vector<8x256xf32>
    %9 = math.absf %3 : vector<8x256xf32>
    %cst_4 = arith.constant 0.000000e+00 : f32
    %10 = vector.broadcast %cst_4 : f32 to vector<8x256xf32>
    %11 = arith.subf %10, %9 : vector<8x256xf32>
    %12 = math.exp %11 : vector<8x256xf32>
    %13 = math.log1p %12 : vector<8x256xf32>
    %14 = arith.addf %8, %13 : vector<8x256xf32>
    %c0_5 = arith.constant 0 : index
    %c0_6 = arith.constant 0 : index
    %15 = vector.load %arg4[%c0_5, %c0_6] : memref<8x128xf32, #tpu.memory_space<vmem>>, vector<8x128xf32>
    %16 = vector.extract_strided_slice %14 {offsets = [0, 0], sizes = [8, 128], strides = [1, 1]} : vector<8x256xf32> to vector<8x128xf32>
    %17 = vector.extract_strided_slice %14 {offsets = [0, 128], sizes = [8, 128], strides = [1, 1]} : vector<8x256xf32> to vector<8x128xf32>
    %18 = arith.addf %16, %17 : vector<8x128xf32>
    %19 = arith.addf %15, %18 : vector<8x128xf32>
    %c0_7 = arith.constant 0 : index
    %c0_8 = arith.constant 0 : index
    %20 = vector.load %arg4[%c0_7, %c0_8] : memref<8x128xf32, #tpu.memory_space<vmem>>, vector<8x128xf32>
    tpu.vector_store %arg4[%c0_7, %c0_8], %19 {strides = array<i32>} : memref<8x128xf32, #tpu.memory_space<vmem>>, vector<8x128xf32>,
    %c0_9 = arith.constant 0 : index
    %c0_10 = arith.constant 0 : index
    %21 = vector.load %arg5[%c0_9, %c0_10] : memref<8x128xf32, #tpu.memory_space<vmem>>, vector<8x128xf32>
    %22 = vector.extract_strided_slice %5 {offsets = [0, 0], sizes = [8, 128], strides = [1, 1]} : vector<8x256xf32> to vector<8x128xf32>
    %23 = vector.extract_strided_slice %5 {offsets = [0, 128], sizes = [8, 128], strides = [1, 1]} : vector<8x256xf32> to vector<8x128xf32>
    %24 = arith.addf %22, %23 : vector<8x128xf32>
    %25 = arith.addf %21, %24 : vector<8x128xf32>
    %c0_11 = arith.constant 0 : index
    %c0_12 = arith.constant 0 : index
    %26 = vector.load %arg5[%c0_11, %c0_12] : memref<8x128xf32, #tpu.memory_space<vmem>>, vector<8x128xf32>
    tpu.vector_store %arg5[%c0_11, %c0_12], %25 {strides = array<i32>} : memref<8x128xf32, #tpu.memory_space<vmem>>, vector<8x128xf32>,
    %c0_13 = arith.constant 0 : index
    %c0_14 = arith.constant 0 : index
    %27 = vector.load %arg6[%c0_13, %c0_14] : memref<8x128xf32, #tpu.memory_space<vmem>>, vector<8x128xf32>
    %28 = vector.extract_strided_slice %3 {offsets = [0, 0], sizes = [8, 128], strides = [1, 1]} : vector<8x256xf32> to vector<8x128xf32>
    %29 = vector.extract_strided_slice %3 {offsets = [0, 128], sizes = [8, 128], strides = [1, 1]} : vector<8x256xf32> to vector<8x128xf32>
    %30 = arith.addf %28, %29 : vector<8x128xf32>
    %31 = arith.addf %27, %30 : vector<8x128xf32>
    %c0_15 = arith.constant 0 : index
    %c0_16 = arith.constant 0 : index
    %32 = vector.load %arg6[%c0_15, %c0_16] : memref<8x128xf32, #tpu.memory_space<vmem>>, vector<8x128xf32>
    tpu.vector_store %arg6[%c0_15, %c0_16], %31 {strides = array<i32>} : memref<8x128xf32, #tpu.memory_space<vmem>>, vector<8x128xf32>,
    %c0_17 = arith.constant 0 : index
    %c0_18 = arith.constant 0 : index
    %33 = vector.load %arg7[%c0_17, %c0_18] : memref<8x128xf32, #tpu.memory_space<vmem>>, vector<8x128xf32>
    %34 = vector.extract_strided_slice %4 {offsets = [0, 0], sizes = [8, 128], strides = [1, 1]} : vector<8x256xf32> to vector<8x128xf32>
    %35 = vector.extract_strided_slice %4 {offsets = [0, 128], sizes = [8, 128], strides = [1, 1]} : vector<8x256xf32> to vector<8x128xf32>
    %36 = arith.addf %34, %35 : vector<8x128xf32>
    %37 = arith.addf %33, %36 : vector<8x128xf32>
    %c0_19 = arith.constant 0 : index
    %c0_20 = arith.constant 0 : index
    %38 = vector.load %arg7[%c0_19, %c0_20] : memref<8x128xf32, #tpu.memory_space<vmem>>, vector<8x128xf32>
    tpu.vector_store %arg7[%c0_19, %c0_20], %37 {strides = array<i32>} : memref<8x128xf32, #tpu.memory_space<vmem>>, vector<8x128xf32>,
    return
  }
  func.func @transform_0(%arg0: i32, %arg1: i32) -> (i32, i32) {
    %c0_i32 = arith.constant 0 : i32
    return %arg0, %arg1 : i32, i32
  }
  func.func @transform_1(%arg0: i32, %arg1: i32) -> (i32, i32) {
    %c0_i32 = arith.constant 0 : i32
    return %arg0, %arg1 : i32, i32
  }
  func.func @transform_2(%arg0: i32, %arg1: i32) -> (i32, i32) {
    %c0_i32 = arith.constant 0 : i32
    %c0_i32_0 = arith.constant 0 : i32
    return %arg0, %c0_i32 : i32, i32
  }
  func.func @transform_3(%arg0: i32, %arg1: i32) -> (i32, i32) {
    %c0_i32 = arith.constant 0 : i32
    %c0_i32_0 = arith.constant 0 : i32
    return %arg0, %c0_i32 : i32, i32
  }
  func.func @transform_4(%arg0: i32, %arg1: i32) -> (i32, i32) {
    %c0_i32 = arith.constant 0 : i32
    %c0_i32_0 = arith.constant 0 : i32
    return %arg0, %c0_i32 : i32, i32
  }
  func.func @transform_5(%arg0: i32, %arg1: i32) -> (i32, i32) {
    %c0_i32 = arith.constant 0 : i32
    %c0_i32_0 = arith.constant 0 : i32
    return %arg0, %c0_i32 : i32, i32
  }
}

</mosaic_0001>

<bundles_post_ra>
// kernel: tpu_custom_call.1
= control target key start
LH: loop header
LB: loop body
LE: loop exit
PB: predicated region body
PF: predicated region fallthrough
CT: control target
= control target key end

     0   :  { %11 = vsyncpa [#allocation3], 0  ;;  %s376_s0 = inlined_call_operand.hbm [shape: f32[8,256], index: 0, kind: input, shape index: {}]   ;;  %s377_s1 = inlined_call_operand.hbm [shape: f32[8,256], index: 1, kind: input, shape index: {}]   ;;  %s378_s2 = inlined_call_operand.hbm [shape: f32[8,128], index: 2, kind: output, shape index: {0}]   ;;  %s379_s3 = inlined_call_operand.hbm [shape: f32[8,128], index: 3, kind: output, shape index: {1}]   ;;  %s380_s4 = inlined_call_operand.hbm [shape: f32[8,128], index: 4, kind: output, shape index: {2}]   ;;  %s381_s5 = inlined_call_operand.hbm [shape: f32[8,128], index: 5, kind: output, shape index: {3}]  }
   0x1   :  { %12 = vsyncpa [#allocation6], 0 }
   0x2   :  { %13 = vsyncpa [#allocation4], 0 }
   0x3   :  { %14 = vsyncpa [#allocation9], 0 }
   0x4   :  { %15 = vsyncpa [#allocation12], 0  ;;  %s306_s18 = smov [#allocation2]   ;;  %s307_s20 = smov [#allocation5]  }
   0x5   :  { %s22_s19 = sshll.u32 %s306_s18, 4  ;;  %s32_s21 = sshll.u32 %s307_s20, 4  ;;  %s23_s19 = int_to_ptr.vmem [resolvable:$true] %s22_s19  ;;  %s33_s21 = int_to_ptr.vmem [resolvable:$true] %s32_s21 }
   0x6   :  { %s184_s22 = scalar_lea.vmem %s23_s19, 256  ;;  %p189_p1 = scmp.lt.s32.totalorder %s23_s19, %s23_s19 }
   0x7   :  { %p185_p0 = scmp.ne.s32.totalorder %s23_s19, %s184_s22  ;;  %p190_p2 = scmp.lt.s32.totalorder %s184_s22, %s184_s22 }
   0x9   :  { %p191_p3 = por %p190_p2, %p189_p1 }
   0xb   :  { %p192_p4 = pnand %p191_p3, %p185_p0 }
   0xd   :  { %195 = shalt.err (!%p192_p4)
}
   0xe   :  { %25 = dma.hbm_to_vmem [thread:$0]  %s376_s0, 256, %s23_s19, [#allocation3]  }
   0xf   :  { %s204_s25 = scalar_lea.vmem %s33_s21, 256  ;;  %p209_p6 = scmp.lt.s32.totalorder %s33_s21, %s33_s21 }
  0x10   :  { %p205_p5 = scmp.ne.s32.totalorder %s33_s21, %s204_s25  ;;  %p210_p7 = scmp.lt.s32.totalorder %s204_s25, %s204_s25 }
  0x12   :  { %p211_p8 = por %p210_p7, %p209_p6 }
  0x14   :  { %p212_p9 = pnand %p211_p8, %p205_p5 }
  0x16   :  { %215 = shalt.err (!%p212_p9)
}
  0x17   :  { %35 = dma.hbm_to_vmem [thread:$0]  %s377_s1, 256, %s33_s21, [#allocation6]  }
  0x18   :  { %296 = dma.done.wait [#allocation3], 256  }
  0x19   :  { %297 = vsyncadd [#allocation3], 4294967040 }
  0x1a   :  { %298 = dma.done.wait [#allocation6], 256  }
  0x1b   :  { %299 = vsyncadd [#allocation6], 4294967040  ;;  %v348_v0 = vld [vmem:[#allocation2] sm:$0xff]  ;;  %v350_v1 = vld [vmem:[#allocation2 + $0x8] sm:$0xff]  ;;  %s308_s0 = smov [#allocation11]   ;;  %s309_s1 = smov [#allocation8]  }
  0x1c   :  { %v52_v2 = vld [vmem:[#allocation5] sm:$0xff]  ;;  %v53_v3 = vld [vmem:[#allocation5 + $0x8] sm:$0xff]  ;;  %v60_v4 = vand.u32 2147483647, %v348_v0  ;;  %v61_v5 = vand.u32 2147483647, %v350_v1  ;;  %v97_v8 = vadd.f32 %v350_v1, %v348_v0 }
  0x1d   :  { %s140_s28 = sshll.u32 %s308_s0, 4  ;;  %v54_v6 = vmul.f32 %v52_v2, %v348_v0  ;;  %v356_v7 = vmul.f32 %v53_v3, %v350_v1  ;;  %v101_v9 = vadd.f32 %v53_v3, %v52_v2  ;;  %s120_s29 = sshll.u32 %s309_s1, 4  ;;  %s141_s28 = int_to_ptr.vmem [resolvable:$true] %s140_s28  ;;  %s121_s29 = int_to_ptr.vmem [resolvable:$true] %s120_s29 }
  0x1e   :  { %v62_v10 = vsub.f32 0.0, %v60_v4  ;;  %v63_v11 = vsub.f32 0.0, %v61_v5  ;;  %s310_s30 = smov [#allocation10]   ;;  %99 = vst [vmem:[#allocation10] sm:$0xff] %v97_v8  ;;  %s216_s7 = scalar_lea.vmem %s141_s28, 128 }
  0x1f   :  { %s130_s6 = sshll.u32 %s310_s30, 4  ;;  %v93_v12 = vadd.f32 %v356_v7, %v54_v6  ;;  %103 = vst [vmem:[#allocation11] sm:$0xff] %v101_v9  ;;  %p217_p10 = scmp.ne.s32.totalorder %s141_s28, %s216_s7  ;;  %s131_s6 = int_to_ptr.vmem [resolvable:$true] %s130_s6 }
  0x20   :  { %v64_v13 = vmul.f32 1.442695, %v62_v10  ;;  %v66_v14 = vmul.f32 1.442695, %v63_v11  ;;  %p221_p11 = scmp.lt.s32.totalorder %s141_s28, %s141_s28  ;;  %p222_p12 = scmp.lt.s32.totalorder %s216_s7, %s216_s7 }
  0x22   :  { %168 = vpow2.f32 %v64_v13  ;;  %p223_p13 = por %p222_p12, %p221_p11 }
  0x24   :  { %p224_p0 = pnand %p223_p13, %p217_p10 }
  0x26   :  { %227 = shalt.err (!%p224_p0)
}
  0x27   :  { %143 = dma.vmem_to_hbm [thread:$0]  %s141_s28, 128, %s381_s5, [#allocation12]   ;;  %170 = vpow2.f32 %v66_v14  ;;  %95 = vst [vmem:[#allocation8] sm:$0xff] %v93_v12 }
  0x28   :  { %s236_s10 = scalar_lea.vmem %s121_s29, 128  ;;  %p241_p2 = scmp.lt.s32.totalorder %s121_s29, %s121_s29 }
  0x29   :  { %p237_p1 = scmp.ne.s32.totalorder %s121_s29, %s236_s10  ;;  %p242_p3 = scmp.lt.s32.totalorder %s236_s10, %s236_s10 }
  0x2b   :  { %p243_p4 = por %p242_p3, %p241_p2 }
  0x2d   :  { %p244_p5 = pnand %p243_p4, %p237_p1 }
  0x2f   :  { %247 = shalt.err (!%p244_p5)
}
  0x30   :  { %123 = dma.vmem_to_hbm [thread:$0]  %s121_s29, 128, %s379_s3, [#allocation9]  }
  0x31   :  { %s256_s13 = scalar_lea.vmem %s131_s6, 128  ;;  %p261_p7 = scmp.lt.s32.totalorder %s131_s6, %s131_s6 }
  0x32   :  { %p257_p6 = scmp.ne.s32.totalorder %s131_s6, %s256_s13  ;;  %p262_p8 = scmp.lt.s32.totalorder %s256_s13, %s256_s13 }
  0x34   :  { %p263_p9 = por %p262_p8, %p261_p7 }
  0x36   :  { %p264_p10 = pnand %p263_p9, %p257_p6 }
  0x38   :  { %267 = shalt.err (!%p264_p10)
}
  0x39   :  { %133 = dma.vmem_to_hbm [thread:$0]  %s131_s6, 128, %s380_s4, [#allocation9]   ;;  %v169_v15 = vpop.eup %168  ;;  %v56_v22 = vmax.f32 %v348_v0, 0.0  ;;  %v57_v25 = vmax.f32 %v350_v1, 0.0 }
  0x3a   :  { %v171_v16 = vpop.eup %170  ;;  %v68_v17 = vadd.f32 1.0, %v169_v15  ;;  %v71_v19 = vmul.f32 -0.5, %v169_v15  ;;  %v74_v23 = vand.u32 2147483647, %v169_v15  ;;  %s311_s3 = smov [#allocation7]  }
  0x3b   :  { %v77_v18 = vadd.f32 1.0, %v171_v16  ;;  %v80_v20 = vmul.f32 -0.5, %v171_v16  ;;  %v83_v26 = vand.u32 2147483647, %v171_v16  ;;  %v58_v29 = vsub.f32 %v56_v22, %v54_v6  ;;  %s110_s4 = sshll.u32 %s311_s3, 4  ;;  %s111_s4 = int_to_ptr.vmem [resolvable:$true] %s110_s4 }
  0x3c   :  { %172 = vlog2.f32 %v68_v17  ;;  %v72_v21 = vadd.f32 1.0, %v71_v19  ;;  %vm75_vm0 = vcmp.lt.f32.partialorder %v74_v23, 0.0004427343  ;;  %v59_v32 = vsub.f32 %v57_v25, %v356_v7  ;;  %s276_s15 = scalar_lea.vmem %s111_s4, 128  ;;  %p281_p12 = scmp.lt.s32.totalorder %s111_s4, %s111_s4 }
  0x3d   :  { %174 = vlog2.f32 %v77_v18  ;;  %v81_v24 = vadd.f32 1.0, %v80_v20  ;;  %vm84_vm1 = vcmp.lt.f32.partialorder %v83_v26, 0.0004427343  ;;  %p277_p11 = scmp.ne.s32.totalorder %s111_s4, %s276_s15  ;;  %p282_p13 = scmp.lt.s32.totalorder %s276_s15, %s276_s15 }
  0x3e   :  { %v73_v27 = vmul.f32 %v169_v15, %v72_v21 }
  0x3f   :  { %v82_v30 = vmul.f32 %v171_v16, %v81_v24  ;;  %p283_p0 = por %p282_p13, %p281_p12 }
  0x41   :  { %p284_p1 = pnand %p283_p0, %p277_p11 }
  0x49   :  { %v173_v28 = vpop.eup %172 }
  0x4a   :  { %v175_v31 = vpop.eup %174  ;;  %v70_v33 = vmul.f32 0.6931472, %v173_v28 }
  0x4b   :  { %v79_v34 = vmul.f32 0.6931472, %v175_v31 }
  0x4c   :  { %v76_v35 = vsel %vm75_vm0, %v73_v27, %v70_v33 }
  0x4d   :  { %v85_v36 = vsel %vm84_vm1, %v82_v30, %v79_v34  ;;  %v86_v37 = vadd.f32 %v76_v35, %v58_v29 }
  0x4e   :  { %v87_v38 = vadd.f32 %v85_v36, %v59_v32 }
  0x50   :  { %v89_v39 = vadd.f32 %v87_v38, %v86_v37 }
  0x52   :  { %91 = vst [vmem:[#allocation7] sm:$0xff] %v89_v39 }
  0x53   :  { %287 = shalt.err (!%p284_p1)
}
  0x54   :  { %113 = dma.vmem_to_hbm [thread:$0]  %s111_s4, 128, %s378_s2, [#allocation4]  }
  0x55   :  { %300 = dma.done.wait [#allocation4], 128  }
  0x56   :  { %301 = vsyncadd [#allocation4], 4294967168 }
  0x57   :  { %302 = dma.done.wait [#allocation9], 256  }
  0x58   :  { %303 = vsyncadd [#allocation9], 4294967040 }
  0x59   :  { %304 = dma.done.wait [#allocation12], 128  }
  0x5a   :  { %305 = vsyncadd [#allocation12], 4294967168 }
  0x5b   :  { %156 = vsyncpa [#allocation3], 1 }
  0x5c   :  { %157 = vsyncpa [#allocation6], 1 }
  0x5d   :  { %158 = vsyncpa [#allocation4], 1 }
  0x5e   :  { %159 = vsyncpa [#allocation9], 1 }
  0x5f   :  { %160 = vsyncpa [#allocation12], 1 }

</bundles_post_ra>
